<compile_context>
chip_gen: v6e
topology: v6e:2x2x1
jax: 0.10.0
libtpu: 0.0.40
codegen_flags: <defaults>
</compile_context>

<pallas_src>
import jax
import jax.numpy as jnp
from jax.experimental import pallas as pl
from jax.experimental.pallas import tpu as pltpu


def _round_up(x, m):
    return ((x + m - 1) // m) * m


def _pad2d(a, rows, cols):
    """Zero-pad a 2-D array up to (rows, cols); no-op when already aligned."""
    r, c = a.shape
    if r == rows and c == cols:
        return a
    return jnp.pad(a, ((0, rows - r), (0, cols - c)))


# --------------------------------------------------------------------------
# Kernel: tiled matmul + bias, accumulating directly into the resident f32
# output block (its BlockSpec index is constant across the K grid axis).
# --------------------------------------------------------------------------
def _matmul_bias_kernel(x_ref, w_ref, b_ref, o_ref):
    @pl.when(pl.program_id(2) == 0)
    def _init():
        o_ref[...] = jnp.zeros_like(o_ref)

    o_ref[...] += jnp.dot(
        x_ref[...], w_ref[...], preferred_element_type=jnp.float32
    )

    @pl.when(pl.program_id(2) == pl.num_programs(2) - 1)
    def _finalize():
        o_ref[...] += b_ref[...]


def _linear_head_padded(xp, wp, bp, *, tm, tn, tk):
    """y = xp @ wp + bp on pre-padded, tile-aligned operands (bf16 in, f32 out)."""
    M_pad, K_pad = xp.shape
    _, N_pad = wp.shape
    grid = (M_pad // tm, N_pad // tn, K_pad // tk)
    # NOTE(v7x megacore): with >=2 blocks on a "parallel" axis (i or j) the grid
    # shards across both TensorCores; the toy shapes below give grid=(1,1,1).
    # TODO(synk): if small tm leaves the streamed W DMA exposed on real shapes,
    # add pipeline_mode=pl.Buffered(3) on the W BlockSpec and sweep 2-4.
    return pl.pallas_call(
        _matmul_bias_kernel,
        out_shape=jax.ShapeDtypeStruct((M_pad, N_pad), jnp.float32),
        grid_spec=pltpu.PrefetchScalarGridSpec(
            num_scalar_prefetch=0,
            grid=grid,
            in_specs=[
                pl.BlockSpec((tm, tk), lambda i, j, k: (i, k)),
                pl.BlockSpec((tk, tn), lambda i, j, k: (k, j)),
                pl.BlockSpec((1, tn), lambda i, j, k: (0, j)),
            ],
            out_specs=pl.BlockSpec((tm, tn), lambda i, j, k: (i, j)),
        ),
        compiler_params=pltpu.CompilerParams(
            dimension_semantics=("parallel", "parallel", "arbitrary"),
            # Double-buffered bf16 tiles at default tm/tn/tk are ~6 MiB;
            # 32 MiB scoped limit is safe on v5e/v6e and on v7x (64 MiB phys).
            vmem_limit_bytes=32 * 1024 * 1024,
        ),
    )(xp, wp, bp)


# --------------------------------------------------------------------------
# One-time parameter prep: fold the per-channel normalization into the linear
# head, pad W/b to tile-aligned extents, cast W to bf16 (MXU-native, halves W
# HBM traffic).  Runs ONCE at model-setup time, not per forward.
# --------------------------------------------------------------------------
def prepare_params(w, b, means, stds, spatial, *, tn=512, tk=2048):
    D, N = w.shape
    w32 = w.astype(jnp.float32)
    inv_std = 1.0 / stds.astype(jnp.float32)                        # (C,)
    scale_flat = jnp.repeat(inv_std, spatial)                       # (C*H*W,)
    shift_flat = jnp.repeat(-means.astype(jnp.float32) * inv_std, spatial)
    w_fold = w32 * scale_flat[:, None]
    b_fold = b.astype(jnp.float32) + shift_flat @ w32

    # Lane-dense tiles (multiples of 128) capped at the rounded extents; pad
    # the extents up to a tile multiple instead of shrinking tiles to a gcd.
    tn = min(tn, _round_up(N, 128))
    tk = min(tk, _round_up(D, 128))
    N_pad = _round_up(N, tn)
    K_pad = _round_up(D, tk)

    wp = _pad2d(w_fold, K_pad, N_pad).astype(jnp.bfloat16)
    bp = _pad2d(b_fold.reshape(1, N), 1, N_pad)                     # f32
    return dict(wp=wp, bp=bp, D=D, N=N, tn=tn, tk=tk, K_pad=K_pad)


# --------------------------------------------------------------------------
# ModelNormWrapper.forward: normalization already folded into (wp, bp), so the
# per-call work is flatten/pad/cast x plus one fused matmul+bias kernel.
# TODO(synk): the real ModelNormWrapper forwards to an arbitrary `model`; for a
# conv-first model, fold the normalization into its first conv instead (or
# scale the x tile in-kernel with a prefetched per-channel inv_std vector).
# --------------------------------------------------------------------------
def model_norm_wrapper_forward(x_nchw, params, *, tm=128):
    B = x_nchw.shape[0]
    x_flat = x_nchw.reshape(B, -1).astype(jnp.float32)
    assert x_flat.shape[1] == params["D"]

    tm = min(tm, _round_up(B, 16))      # multiple of 16: bf16 sublane packing
    M_pad = _round_up(B, tm)
    xp = _pad2d(x_flat, M_pad, params["K_pad"]).astype(jnp.bfloat16)

    out = _linear_head_padded(xp, params["wp"], params["bp"],
                              tm=tm, tn=params["tn"], tk=params["tk"])
    return out[:B, :params["N"]]


if __name__ == "__main__":
    key = jax.random.PRNGKey(0)
    B, C, H, W = 2, 3, 16, 16          # module hardcodes 3 channels
    num_classes = 10
    D = C * H * W

    k_x, k_w, k_b = jax.random.split(key, 3)
    x = jax.random.uniform(k_x, (B, C, H, W), dtype=jnp.float32)

    # CIFAR-style per-channel normalization constants (deterministic).
    means = jnp.array([0.4914, 0.4822, 0.4465], dtype=jnp.float32)
    stds = jnp.array([0.2471, 0.2435, 0.2616], dtype=jnp.float32)

    # Deterministic synthetic classifier parameters (the "wrapped model").
    w = jax.random.normal(k_w, (D, num_classes), dtype=jnp.float32) * 0.02
    b = jax.random.normal(k_b, (num_classes,), dtype=jnp.float32) * 0.01

    # One-time prep (fold + pad + bf16 cast), hoisted off the forward path.
    params = prepare_params(w, b, means, stds, H * W)
    fwd = jax.jit(lambda xi: model_norm_wrapper_forward(xi, params))

    logits = fwd(x)
    jax.block_until_ready(logits)

    # 1) Tight check vs. a reference built from identically bf16-rounded
    #    operands (isolates kernel correctness from the bf16 cast).
    inv_std = 1.0 / stds
    scale_flat = jnp.repeat(inv_std, H * W)
    shift_flat = jnp.repeat(-means * inv_std, H * W)
    w_fold = w * scale_flat[:, None]
    b_fold = b + shift_flat @ w
    x_bf = x.reshape(B, -1).astype(jnp.bfloat16).astype(jnp.float32)
    w_bf = w_fold.astype(jnp.bfloat16).astype(jnp.float32)
    ref_bf = x_bf @ w_bf + b_fold
    assert jnp.allclose(logits, ref_bf, atol=5e-3, rtol=5e-3), (
        float(jnp.max(jnp.abs(logits - ref_bf))))

    # 2) Loose check vs. the unfused f32 reference of the original module
    #    (bf16 dot operands => relaxed tolerance; accumulation is f32).
    xn_ref = (x - means.reshape(3, 1, 1)) / stds.reshape(3, 1, 1)
    ref = xn_ref.reshape(B, -1) @ w + b
    assert jnp.allclose(logits, ref, atol=5e-2, rtol=5e-2), (
        float(jnp.max(jnp.abs(logits - ref))))

    print("KERNEL_OK")
</pallas_src>

<mosaic_0001>
module attributes {stable_mosaic.version = 11 : i64} {
  func.func @_matmul_bias_kernel(%arg0: i32, %arg1: i32, %arg2: i32, %arg3: memref<16x768xbf16, #tpu.memory_space<vmem>>, %arg4: memref<768x128xbf16, #tpu.memory_space<vmem>>, %arg5: memref<1x128xf32, #tpu.memory_space<vmem>>, %arg6: memref<16x128xf32, #tpu.memory_space<vmem>>) attributes {dimension_semantics = [#tpu.dimension_semantics<parallel>, #tpu.dimension_semantics<parallel>, #tpu.dimension_semantics<arbitrary>], iteration_bounds = array<i64: 1, 1, 1>, scalar_prefetch = 0 : i64, scratch_operands = 0 : i64, tpu.core_type = #tpu.core_type<tc>, window_params = [{transform_indices = @transform_0, window_bounds = array<i64: 16, 768>}, {transform_indices = @transform_1, window_bounds = array<i64: 768, 128>}, {transform_indices = @transform_2, window_bounds = array<i64: 1, 128>}, {transform_indices = @transform_3, window_bounds = array<i64: 16, 128>}]} {
    %c0_i32 = arith.constant 0 : i32
    %0 = arith.cmpi eq, %arg2, %c0_i32 : i32
    %1 = arith.extui %0 : i1 to i32
    %c0_i32_0 = arith.constant 0 : i32
    %2 = arith.cmpi ne, %1, %c0_i32_0 : i32
    scf.if %2 {
      %cst_10 = arith.constant 0.000000e+00 : f32
      %12 = vector.broadcast %cst_10 : f32 to vector<16x128xf32>
      %c0_11 = arith.constant 0 : index
      %c0_12 = arith.constant 0 : index
      %13 = vector.load %arg6[%c0_11, %c0_12] : memref<16x128xf32, #tpu.memory_space<vmem>>, vector<16x128xf32>
      tpu.vector_store %arg6[%c0_11, %c0_12], %12 {strides = array<i32>} : memref<16x128xf32, #tpu.memory_space<vmem>>, vector<16x128xf32>,
    } else {
    }
    %c0 = arith.constant 0 : index
    %c0_1 = arith.constant 0 : index
    %3 = vector.load %arg6[%c0, %c0_1] : memref<16x128xf32, #tpu.memory_space<vmem>>, vector<16x128xf32>
    %c0_2 = arith.constant 0 : index
    %c0_3 = arith.constant 0 : index
    %4 = vector.load %arg3[%c0_2, %c0_3] : memref<16x768xbf16, #tpu.memory_space<vmem>>, vector<16x768xbf16>
    %c0_4 = arith.constant 0 : index
    %c0_5 = arith.constant 0 : index
    %5 = vector.load %arg4[%c0_4, %c0_5] : memref<768x128xbf16, #tpu.memory_space<vmem>>, vector<768x128xbf16>
    %cst = arith.constant dense<0.000000e+00> : vector<16x128xf32>
    %6 = tpu.matmul %4, %5, %cst {dimension_numbers = #tpu.dot_dimension_numbers<[1], [0], [0], [1], [0, 0, 1, 1], [], []>} : vector<16x768xbf16>, vector<768x128xbf16>, vector<16x128xf32> -> vector<16x128xf32>
    %7 = arith.addf %3, %6 : vector<16x128xf32>
    %c0_6 = arith.constant 0 : index
    %c0_7 = arith.constant 0 : index
    %8 = vector.load %arg6[%c0_6, %c0_7] : memref<16x128xf32, #tpu.memory_space<vmem>>, vector<16x128xf32>
    tpu.vector_store %arg6[%c0_6, %c0_7], %7 {strides = array<i32>} : memref<16x128xf32, #tpu.memory_space<vmem>>, vector<16x128xf32>,
    %c0_i32_8 = arith.constant 0 : i32
    %9 = arith.cmpi eq, %arg2, %c0_i32_8 : i32
    %10 = arith.extui %9 : i1 to i32
    %c0_i32_9 = arith.constant 0 : i32
    %11 = arith.cmpi ne, %10, %c0_i32_9 : i32
    scf.if %11 {
      %c0_10 = arith.constant 0 : index
      %c0_11 = arith.constant 0 : index
      %12 = vector.load %arg6[%c0_10, %c0_11] : memref<16x128xf32, #tpu.memory_space<vmem>>, vector<16x128xf32>
      %c0_12 = arith.constant 0 : index
      %c0_13 = arith.constant 0 : index
      %13 = vector.load %arg5[%c0_12, %c0_13] : memref<1x128xf32, #tpu.memory_space<vmem>>, vector<1x128xf32>
      %14 = vector.broadcast %13 : vector<1x128xf32> to vector<16x128xf32>
      %15 = arith.addf %12, %14 : vector<16x128xf32>
      %c0_14 = arith.constant 0 : index
      %c0_15 = arith.constant 0 : index
      %16 = vector.load %arg6[%c0_14, %c0_15] : memref<16x128xf32, #tpu.memory_space<vmem>>, vector<16x128xf32>
      tpu.vector_store %arg6[%c0_14, %c0_15], %15 {strides = array<i32>} : memref<16x128xf32, #tpu.memory_space<vmem>>, vector<16x128xf32>,
    } else {
    }
    return
  }
  func.func @transform_0(%arg0: i32, %arg1: i32, %arg2: i32) -> (i32, i32) {
    %c0_i32 = arith.constant 0 : i32
    return %arg0, %arg2 : i32, i32
  }
  func.func @transform_1(%arg0: i32, %arg1: i32, %arg2: i32) -> (i32, i32) {
    %c0_i32 = arith.constant 0 : i32
    return %arg2, %arg1 : i32, i32
  }
  func.func @transform_2(%arg0: i32, %arg1: i32, %arg2: i32) -> (i32, i32) {
    %c0_i32 = arith.constant 0 : i32
    %c0_i32_0 = arith.constant 0 : i32
    return %c0_i32, %arg1 : i32, i32
  }
  func.func @transform_3(%arg0: i32, %arg1: i32, %arg2: i32) -> (i32, i32) {
    %c0_i32 = arith.constant 0 : i32
    return %arg0, %arg1 : i32, i32
  }
}

</mosaic_0001>

<bundles_post_ra>
// kernel: _lambda_.1
= control target key start
LH: loop header
LB: loop body
LE: loop exit
PB: predicated region body
PF: predicated region fallthrough
CT: control target
= control target key end

     0   :  { %8 = vsyncpa [#allocation3], 0  ;;  %s809_s12 = smov [#allocation2]   ;;  %s862_s0 = inlined_call_operand.vmem [shape: bf16[16,768], index: 0, kind: input, shape index: {}]   ;;  %s863_s1 = inlined_call_operand.hbm [shape: bf16[768,128], index: 1, kind: input, shape index: {}]   ;;  %s864_s2 = inlined_call_operand.vmem [shape: f32[1,128], index: 2, kind: input, shape index: {}]   ;;  %s865_s3 = inlined_call_operand.vmem [shape: f32[16,128], index: 3, kind: output, shape index: {}]  }
   0x1   :  { %s16_s13 = sshll.u32 %s809_s12, 4  ;;  %s17_s13 = int_to_ptr.vmem [resolvable:$true] %s16_s13 }
   0x2   :  { %s795_s14 = scalar_lea.vmem %s17_s13, 6144  ;;  %p800_p1 = scmp.lt.s32.totalorder %s17_s13, %s17_s13 }
   0x3   :  { %p796_p0 = scmp.ne.s32.totalorder %s17_s13, %s795_s14  ;;  %p801_p2 = scmp.lt.s32.totalorder %s795_s14, %s795_s14 }
   0x5   :  { %p802_p3 = por %p801_p2, %p800_p1 }
   0x7   :  { %p803_p4 = pnand %p802_p3, %p796_p0 }
   0x9   :  { %806 = shalt.err (!%p803_p4)
}
   0xa   :  { %s810_s15 = smov 64   ;;  %s811_s16 = smov 4  }
   0xb   :  { %22 = dma.hbm_to_vmem [thread:$0]  %s863_s1, 6144, %s17_s13, [#allocation3], %s810_s15, %s810_s15, %s811_s16  }
   0xc   :  { %807 = dma.done.wait [#allocation3], 6144  }
   0xd   :  { %808 = vsyncadd [#allocation3], 4294961152  ;;  %v730_v0 = vld [vmem:[#allocation2 + $0x78] sm:$0xff]   ;;  %v734_v4 = vld [vmem:[#allocation2 + $0x70] sm:$0xff]  }
   0xe   :  { %v731_v1 = vld [vmem:[#allocation2 + $0xf8] sm:$0xff]   ;;  %660 = vmatprep.subr.bf16.mxu0 %v730_v0  ;;  %v735_v5 = vld [vmem:[#allocation2 + $0xf0] sm:$0xff]   ;;  %v738_v8 = vld [vmem:[#allocation2 + $0x68] sm:$0xff]  }
   0xf   :  { %v732_v2 = vld [vmem:[#allocation2 + $0x38] sm:$0xff]   ;;  %682 = vmatprep.subr.bf16.mxu1 %v731_v1  ;;  %v736_v6 = vld [vmem:[#allocation2 + $0x30] sm:$0xff]   ;;  %v739_v9 = vld [vmem:[#allocation2 + $0xe8] sm:$0xff]  }
  0x10   :  { %v733_v3 = vld [vmem:[#allocation2 + $0xb8] sm:$0xff]   ;;  %661 = vmatpush3.bf16.msra.mxu0 %v732_v2  ;;  %v737_v7 = vld [vmem:[#allocation2 + $0xb0] sm:$0xff]   ;;  %v740_v10 = vld [vmem:[#allocation2 + $0x28] sm:$0xff]  }
  0x11   :  { %683 = vmatpush3.bf16.msra.mxu1 %v733_v3  ;;  %662 = vmatprep.subr.bf16.mxu0 %v734_v4  ;;  %v741_v11 = vld [vmem:[#allocation2 + $0xa8] sm:$0xff]   ;;  %v742_v12 = vld [vmem:[#allocation2 + $0x60] sm:$0xff]   ;;  %v746_v16 = vld [vmem:[#allocation2 + $0x58] sm:$0xff]  }
  0x12   :  { %684 = vmatprep.subr.bf16.mxu1 %v735_v5  ;;  %v743_v13 = vld [vmem:[#allocation2 + $0xe0] sm:$0xff]   ;;  %v747_v17 = vld [vmem:[#allocation2 + $0xd8] sm:$0xff]   ;;  %v750_v20 = vld [vmem:[#allocation2 + $0x50] sm:$0xff]  }
  0x13   :  { %v744_v14 = vld [vmem:[#allocation2 + $0x20] sm:$0xff]   ;;  %v748_v18 = vld [vmem:[#allocation2 + $0x18] sm:$0xff]   ;;  %v751_v21 = vld [vmem:[#allocation2 + $0xd0] sm:$0xff]  }
  0x14   :  { %663 = vmatpush3.bf16.msra.mxu0 %v736_v6  ;;  %v745_v15 = vld [vmem:[#allocation2 + $0xa0] sm:$0xff]   ;;  %v749_v19 = vld [vmem:[#allocation2 + $0x98] sm:$0xff]   ;;  %v752_v22 = vld [vmem:[#allocation2 + $0x10] sm:$0xff]  }
  0x15   :  { %685 = vmatpush3.bf16.msra.mxu1 %v737_v7  ;;  %664 = vmatprep.subr.bf16.mxu0 %v738_v8  ;;  %v753_v23 = vld [vmem:[#allocation2 + $0x90] sm:$0xff]   ;;  %v754_v24 = vld [vmem:[#allocation2 + $0x48] sm:$0xff]   ;;  %v758_v28 = vld [vmem:[#allocation2 + $0x40] sm:$0xff]  }
  0x16   :  { %686 = vmatprep.subr.bf16.mxu1 %v739_v9  ;;  %v755_v25 = vld [vmem:[#allocation2 + $0xc8] sm:$0xff]   ;;  %v759_v29 = vld [vmem:[#allocation2 + $0xc0] sm:$0xff]   ;;  %v768_v36 = vld [vmem:[#allocation2 + $0x178] sm:$0xff]  }
  0x17   :  { %v756_v26 = vld [vmem:[#allocation2 + $0x8] sm:$0xff]   ;;  %v760_v30 = vld [vmem:[#allocation2] sm:$0xff]   ;;  %v769_v37 = vld [vmem:[#allocation2 + $0x138] sm:$0xff]  }
  0x18   :  { %665 = vmatpush3.bf16.msra.mxu0 %v740_v10  ;;  %v757_v27 = vld [vmem:[#allocation2 + $0x88] sm:$0xff]   ;;  %v761_v31 = vld [vmem:[#allocation2 + $0x80] sm:$0xff]   ;;  %v770_v38 = vld [vmem:[#allocation2 + $0x170] sm:$0xff]  }
  0x19   :  { %687 = vmatpush3.bf16.msra.mxu1 %v741_v11  ;;  %666 = vmatprep.subr.bf16.mxu0 %v742_v12  ;;  %v762_v32 = vld [vmem:[%s862_s0] ss:$24 sps:$4 sm:$0xff]   ;;  %v764_v33 = vld [vmem:[%s862_s0 + $0x4] ss:$24 sps:$4 sm:$0xff]   ;;  %v771_v39 = vld [vmem:[#allocation2 + $0x130] sm:$0xff]  }
  0x1a   :  { %688 = vmatprep.subr.bf16.mxu1 %v743_v13  ;;  %v765_v34 = vld [vmem:[%s862_s0 + $0x8] ss:$24 sps:$4 sm:$0xff]   ;;  %v767_v35 = vld [vmem:[%s862_s0 + $0xc] ss:$24 sps:$4 sm:$0xff]   ;;  %489 = vmatprep.mubr.bf16.mxu0 %v764_v33  ;;  %v776_v44 = vld [vmem:[#allocation2 + $0x158] sm:$0xff]  }
  0x1b   :  { %530 = vmatprep.mubr.bf16.mxu1 %v767_v35  ;;  %v772_v40 = vld [vmem:[#allocation2 + $0x168] sm:$0xff]   ;;  %v774_v42 = vld [vmem:[#allocation2 + $0x160] sm:$0xff]   ;;  %v777_v45 = vld [vmem:[#allocation2 + $0x118] sm:$0xff]  }
  0x1c   :  { %667 = vmatpush3.bf16.msra.mxu0 %v744_v14  ;;  %v773_v41 = vld [vmem:[#allocation2 + $0x128] sm:$0xff]   ;;  %v775_v43 = vld [vmem:[#allocation2 + $0x120] sm:$0xff]   ;;  %v778_v46 = vld [vmem:[#allocation2 + $0x150] sm:$0xff]  }
  0x1d   :  { %689 = vmatpush3.bf16.msra.mxu1 %v745_v15  ;;  %668 = vmatprep.subr.bf16.mxu0 %v746_v16  ;;  %v786_v47 = vld [vmem:[%s862_s0 + $0x14] ss:$24 sps:$4 sm:$0xff]   ;;  %v782_v51 = vld [vmem:[#allocation2 + $0x140] sm:$0xff]   ;;  %v784_v53 = vld [vmem:[%s862_s0 + $0x10] ss:$24 sps:$4 sm:$0xff]  }
  0x1e   :  { %690 = vmatprep.subr.bf16.mxu1 %v747_v17  ;;  %v779_v48 = vld [vmem:[#allocation2 + $0x110] sm:$0xff]   ;;  %v780_v49 = vld [vmem:[#allocation2 + $0x148] sm:$0xff]   ;;  %v783_v52 = vld [vmem:[#allocation2 + $0x100] sm:$0xff]  }
  0x1f   :  { %v781_v50 = vld [vmem:[#allocation2 + $0x108] sm:$0xff]   ;;  %v659_v8 = vld [vmem:[%s864_s2] ss:$0 sm:$0xff] }
  0x20   :  { %669 = vmatpush3.bf16.msra.mxu0 %v748_v18 }
  0x21   :  { %691 = vmatpush3.bf16.msra.mxu1 %v749_v19  ;;  %670 = vmatprep.subr.bf16.mxu0 %v750_v20 }
  0x22   :  { %692 = vmatprep.subr.bf16.mxu1 %v751_v21 }
  0x24   :  { %671 = vmatpush3.bf16.msra.mxu0 %v752_v22 }
  0x25   :  { %693 = vmatpush3.bf16.msra.mxu1 %v753_v23  ;;  %672 = vmatprep.subr.bf16.mxu0 %v754_v24 }
  0x26   :  { %694 = vmatprep.subr.bf16.mxu1 %v755_v25 }
  0x28   :  { %673 = vmatpush3.bf16.msra.mxu0 %v756_v26 }
  0x29   :  { %695 = vmatpush3.bf16.msra.mxu1 %v757_v27  ;;  %674 = vmatprep.subr.bf16.mxu0 %v758_v28 }
  0x2a   :  { %696 = vmatprep.subr.bf16.mxu1 %v759_v29 }
  0x2c   :  { %675 = vmatpush3.bf16.msra.mxu0 %v760_v30 }
  0x2d   :  { %697 = vmatpush3.bf16.msra.mxu1 %v761_v31  ;;  %704 = vmatprep.subr.bf16.mxu0 %v768_v36 }
  0x2f   :  { %490 = vmatmul.mubr.bf16.vlgmr.msra.gmra.mxu0 %v762_v32 }
  0x30   :  { %531 = vmatmul.mubr.bf16.vlgmr.msra.gmra.mxu1 %v765_v34  ;;  %705 = vmatpush3.bf16.msra.mxu0 %v769_v37 }
  0x31   :  { %706 = vmatprep.subr.bf16.mxu0 %v770_v38  ;;  %571 = vmatprep.mubr.bf16.mxu0 %v786_v47 }
  0x34   :  { %707 = vmatpush3.bf16.msra.mxu0 %v771_v39 }
  0x35   :  { %708 = vmatprep.subr.bf16.mxu0 %v772_v40 }
  0x38   :  { %709 = vmatpush3.bf16.msra.mxu0 %v773_v41 }
  0x39   :  { %710 = vmatprep.subr.bf16.mxu0 %v774_v42 }
  0x3c   :  { %711 = vmatpush3.bf16.msra.mxu0 %v775_v43 }
  0x3d   :  { %712 = vmatprep.subr.bf16.mxu0 %v776_v44 }
  0x40   :  { %713 = vmatpush3.bf16.msra.mxu0 %v777_v45 }
  0x41   :  { %714 = vmatprep.subr.bf16.mxu0 %v778_v46 }
  0x44   :  { %715 = vmatpush3.bf16.msra.mxu0 %v779_v48 }
  0x45   :  { %716 = vmatprep.subr.bf16.mxu0 %v780_v49 }
  0x48   :  { %717 = vmatpush3.bf16.msra.mxu0 %v781_v50 }
  0x49   :  { %718 = vmatprep.subr.bf16.mxu0 %v782_v51 }
  0x4c   :  { %719 = vmatpush3.bf16.msra.mxu0 %v783_v52 }
  0x4f   :  { %572 = vmatmul.mubr.bf16.vlgmr.msra.gmra.mxu0 %v784_v53 }
  0xef   :  { %v676_v54 = vpop.f32.mrf.mxu0 }
  0xf0   :  { %v698_v55 = vpop.f32.mrf.mxu1 }
  0xf1   :  { %v677_v56 = vpop.f32.mrf.mxu0 }
  0xf2   :  { %v699_v57 = vpop.f32.mrf.mxu1  ;;  %v678_v61 = vadd.f32 %v677_v56, %v676_v54 }
  0xf3   :  { %v679_v58 = vpop.f32.mrf.mxu0  ;;  %v700_v62 = vadd.f32 %v699_v57, %v698_v55 }
  0xf4   :  { %v701_v59 = vpop.f32.mrf.mxu1 }
  0xf5   :  { %v680_v60 = vpop.f32.mrf.mxu0  ;;  %v533_v2 = vadd.f32 %v700_v62, %v678_v61 }
  0xf6   :  { %v702_v63 = vpop.f32.mrf.mxu1  ;;  %v681_v3 = vadd.f32 %v680_v60, %v679_v58 }
  0xf7   :  { %v703_v4 = vadd.f32 %v702_v63, %v701_v59 }
  0xf9   :  { %v536_v10 = vadd.f32 %v703_v4, %v681_v3 }
 0x10f   :  { %v720_v0 = vpop.f32.mrf.mxu0 }
 0x111   :  { %v721_v1 = vpop.f32.mrf.mxu0 }
 0x112   :  { %v722_v5 = vadd.f32 %v721_v1, %v720_v0 }
 0x113   :  { %v723_v6 = vpop.f32.mrf.mxu0 }
 0x114   :  { %v574_v7 = vadd.f32 %v722_v5, %v533_v2 }
 0x115   :  { %v724_v9 = vpop.f32.mrf.mxu0 }
 0x116   :  { %v725_v11 = vadd.f32 %v724_v9, %v723_v6  ;;  %v596_v12 = vadd.f32 %v659_v8, %v574_v7 }
 0x118   :  { %v577_v13 = vadd.f32 %v725_v11, %v536_v10  ;;  %598 = vst [vmem:[%s865_s3] sm:$0xff] %v596_v12 }
 0x11a   :  { %v597_v14 = vadd.f32 %v659_v8, %v577_v13 }
 0x11c   :  { %599 = vst [vmem:[%s865_s3 + $0x8] sm:$0xff] %v597_v14 }
 0x11d   :  { %604 = vsyncpa [#allocation3], 1 }

</bundles_post_ra>
